<compile_context>
chip_gen: v6e
topology: v6e:2x2x1
jax: 0.10.0
libtpu: 0.0.40
codegen_flags: <defaults>
</compile_context>

<pallas_src>
import functools
import math

import jax
import jax.numpy as jnp
from jax.experimental import pallas as pl
from jax.experimental.pallas import tpu as pltpu


def _res_block_kernel(x_ref, w1_ref, w2_ref, bias_ref, out_ref, *, H):
    # x_ref:    (M, lanes_in)            M = images_per_step * H, lane-folded
    # w1_ref:   (3, lanes_in, lanes_mid) per-row-tap banded conv1 (BN scale folded in)
    # w2_ref:   (3, lanes_mid, lanes_out)
    # bias_ref: (1, lanes_mid)           eval-mode BN bias (tiled over fold*W)
    # out_ref:  (M, lanes_out)
    M = x_ref.shape[0]
    x = x_ref[...]                                          # (M, lanes_in)

    # Within-image row index: each block holds whole images stacked on the
    # sublane axis, so row % H marks per-image boundaries (and the roll-wrap
    # row).  When only one image is in the block, skip the modulo.
    row = jax.lax.broadcasted_iota(jnp.int32, (M, 1), 0)
    rh = row % H if M > H else row
    up_m = (rh > 0).astype(jnp.float32)                     # has a valid row h-1
    dn_m = (rh < H - 1).astype(jnp.float32)                 # has a valid row h+1

    def conv3x3_rows(a, w_taps):
        # 3x3 / pad 1 conv as 3 accumulated MXU matmuls; +/-1 row shift is a
        # sublane roll (XLU slot), boundary/wrap rows zero-masked (VPU mul).
        a_up = pltpu.roll(a, 1, 0) * up_m                   # a[h-1]
        a_dn = pltpu.roll(a, M - 1, 0) * dn_m               # a[h+1] (roll by -1)
        r = jnp.dot(a_up, w_taps[0], preferred_element_type=jnp.float32)
        r += jnp.dot(a, w_taps[1], preferred_element_type=jnp.float32)
        r += jnp.dot(a_dn, w_taps[2], preferred_element_type=jnp.float32)
        return r

    # conv1 (+BN: scale already folded into w1 columns, only bias here)
    y = conv3x3_rows(x, w1_ref) + bias_ref[...]             # (M, lanes_mid)

    # conv2 + exact-erf GELU (== torch.nn.GELU() default)
    z = conv3x3_rows(y, w2_ref)                             # (M, lanes_out)
    g = 0.5 * z * (1.0 + jax.lax.erf(z * (1.0 / math.sqrt(2.0))))

    # residual add (Cin == Cout, identical lane-folded layout)
    out_ref[...] = (g + x).astype(out_ref.dtype)


def _band_weight_taps(w_hwio, W):
    """(3,3,Cin,Cout) HWIO -> (3, W*Cin, W*Cout) per-row-tap banded matrices.

    Tap kh multiplies image row h+kh-1; within a tap, row index = w'*Cin + ci,
    column = w*Cout + co, value = w[kh, w'-w+1, ci, co] when |w'-w| <= 1 else
    0, so one matmul per tap realizes the W-direction conv incl. zero padding.
    """
    kH, kW, cin, cout = w_hwio.shape
    # TODO(synk): hard-codes kW//2 padding (k=3, p=1 as used by this module).
    m = jnp.zeros((kH, W, cin, W, cout), w_hwio.dtype)
    for kw in range(kW):
        for w in range(W):
            wp = w + kw - (kW // 2)
            if 0 <= wp < W:
                m = m.at[:, wp, :, w, :].set(w_hwio[:, kw, :, :])
    return m.reshape(kH, W * cin, W * cout)


def _fold_block_diag(wb_taps, lane_fold):
    """(3, K, Nc) -> (3, lane_fold*K, lane_fold*Nc) block-diagonal over folds."""
    _, K, Nc = wb_taps.shape
    out = jnp.zeros((3, lane_fold * K, lane_fold * Nc), wb_taps.dtype)
    for f in range(lane_fold):
        out = out.at[:, f * K:(f + 1) * K, f * Nc:(f + 1) * Nc].set(wb_taps)
    return out


def prepare_res_block_params(w1, w2, bn_scale, bn_bias, W, lane_fold):
    """One-time prep (off the hot path): BN-fold, band, lane-fold the weights."""
    w1s = w1.astype(jnp.float32) * bn_scale.astype(jnp.float32)[None, None, None, :]
    w1b = _fold_block_diag(_band_weight_taps(w1s, W), lane_fold)
    w2b = _fold_block_diag(_band_weight_taps(w2.astype(jnp.float32), W), lane_fold)
    bias_row = jnp.tile(bn_bias.astype(jnp.float32), lane_fold * W).reshape(1, -1)
    return w1b, w2b, bias_row


@jax.jit
def res_block_forward(x_nhwc, w1b, w2b, bias_row):
    """x_nhwc: (N, H, W, Cin) f32; w1b/w2b/bias_row from prepare_res_block_params."""
    N, H, W, Cin = x_nhwc.shape
    lanes_in = w1b.shape[1]
    lanes_mid = w1b.shape[2]
    lanes_out = w2b.shape[2]
    lane_fold = lanes_in // (W * Cin)
    assert lane_fold >= 1 and N % lane_fold == 0
    Cout = lanes_out // (lane_fold * W)
    assert Cout == Cin, "residual add requires inplanes == planes"
    n_packed = N // lane_fold

    # Pack: fold `lane_fold` images onto the lane axis, stack packed images
    # on the sublane axis.  (N,H,W,C) -> (n_packed*H, lane_fold*W*C).
    x2d = x_nhwc.reshape(n_packed, lane_fold, H, W * Cin)
    x2d = jnp.transpose(x2d, (0, 2, 1, 3)).reshape(n_packed * H, lanes_in)

    # Step sizing: target ~128 sublane rows/step, but keep >=2 parallel steps
    # when >=2 packed images exist (v7x: 2 TensorCores; v5e/v6e: serial grid).
    imgs_per_step = max(1, min(n_packed, max(1, 128 // H)))
    if n_packed >= 2:
        imgs_per_step = max(1, min(imgs_per_step, n_packed // 2))
    while n_packed % imgs_per_step:
        imgs_per_step -= 1
    n_steps = n_packed // imgs_per_step
    m_rows = imgs_per_step * H
    assert n_steps == 1 or m_rows % 8 == 0

    grid_spec = pltpu.PrefetchScalarGridSpec(
        num_scalar_prefetch=0,
        grid=(n_steps,),
        in_specs=[
            pl.BlockSpec((m_rows, lanes_in), lambda g: (g, 0)),
            pl.BlockSpec((3, lanes_in, lanes_mid), lambda g: (0, 0, 0)),
            pl.BlockSpec((3, lanes_mid, lanes_out), lambda g: (0, 0, 0)),
            pl.BlockSpec((1, lanes_mid), lambda g: (0, 0)),
        ],
        out_specs=pl.BlockSpec((m_rows, lanes_out), lambda g: (g, 0)),
    )
    out2d = pl.pallas_call(
        functools.partial(_res_block_kernel, H=H),
        out_shape=jax.ShapeDtypeStruct((n_packed * H, lanes_out), x_nhwc.dtype),
        grid_spec=grid_spec,
        compiler_params=pltpu.CompilerParams(
            dimension_semantics=("parallel",)),
    )(x2d, w1b, w2b, bias_row)

    # Unpack back to NHWC.
    out = out2d.reshape(n_packed, H, lane_fold, W * Cout)
    out = jnp.transpose(out, (0, 2, 1, 3)).reshape(N, H, W, Cout)
    return out


def _reference_forward(x_nhwc, w1, w2, bn_scale, bn_bias):
    """Pure-JAX reference for correctness checking."""
    dn = ("NHWC", "HWIO", "NHWC")
    y = jax.lax.conv_general_dilated(x_nhwc, w1, (1, 1), "SAME",
                                     dimension_numbers=dn)
    y = y * bn_scale.reshape(1, 1, 1, -1) + bn_bias.reshape(1, 1, 1, -1)
    y = jax.lax.conv_general_dilated(y, w2, (1, 1), "SAME",
                                     dimension_numbers=dn)
    y = jax.nn.gelu(y, approximate=False)
    return y + x_nhwc


if __name__ == "__main__":
    # Small shapes consistent with the module: inplanes == planes == 4.
    N, C, H, W = 2, 4, 16, 16
    inplanes = planes = C

    key = jax.random.PRNGKey(0)
    kx, kw1, kw2, kg, kb, km, kv = jax.random.split(key, 7)

    # Input built in PyTorch NCHW convention, transposed to the kernel's NHWC.
    x_nchw = jax.random.normal(kx, (N, C, H, W), dtype=jnp.float32)
    x_nhwc = jnp.transpose(x_nchw, (0, 2, 3, 1))

    # Conv weights (kaiming-uniform-style bound), HWIO layout, no bias.
    b1 = 1.0 / math.sqrt(inplanes * 3 * 3)
    b2 = 1.0 / math.sqrt(planes * 3 * 3)
    w1 = jax.random.uniform(kw1, (3, 3, inplanes, planes), jnp.float32, -b1, b1)
    w2 = jax.random.uniform(kw2, (3, 3, planes, planes), jnp.float32, -b2, b2)

    # BatchNorm2d(planes) params / running stats, folded to scale & bias (eval).
    gamma = jax.random.uniform(kg, (planes,), jnp.float32, 0.5, 1.5)
    beta = 0.1 * jax.random.normal(kb, (planes,), dtype=jnp.float32)
    run_mean = 0.1 * jax.random.normal(km, (planes,), dtype=jnp.float32)
    run_var = jax.random.uniform(kv, (planes,), jnp.float32, 0.5, 1.5)
    eps = 1e-5
    bn_scale = gamma / jnp.sqrt(run_var + eps)
    bn_bias = beta - run_mean * bn_scale

    # One-time weight prep (banding + BN-scale folding + lane folding).
    lane_fold = 2 if N % 2 == 0 else 1   # 2*W*C = 128 lanes when possible
    w1b, w2b, bias_row = prepare_res_block_params(
        w1, w2, bn_scale, bn_bias, W, lane_fold)

    out = res_block_forward(x_nhwc, w1b, w2b, bias_row)
    out = jax.block_until_ready(out)

    ref = _reference_forward(x_nhwc, w1, w2, bn_scale, bn_bias)
    assert out.shape == (N, H, W, C)
    assert jnp.allclose(out, ref, rtol=1e-4, atol=1e-4), (
        float(jnp.max(jnp.abs(out - ref))))

    print("KERNEL_OK")
</pallas_src>

<mosaic_0001>
module attributes {stable_mosaic.version = 11 : i64} {
  func.func @_res_block_kernel(%arg0: i32, %arg1: memref<16x128xf32, #tpu.memory_space<vmem>>, %arg2: memref<3x128x128xf32, #tpu.memory_space<vmem>>, %arg3: memref<3x128x128xf32, #tpu.memory_space<vmem>>, %arg4: memref<1x128xf32, #tpu.memory_space<vmem>>, %arg5: memref<16x128xf32, #tpu.memory_space<vmem>>) attributes {dimension_semantics = [#tpu.dimension_semantics<parallel>], iteration_bounds = array<i64: 1>, scalar_prefetch = 0 : i64, scratch_operands = 0 : i64, tpu.core_type = #tpu.core_type<tc>, window_params = [{transform_indices = @transform_0, window_bounds = array<i64: 16, 128>}, {pipeline_mode = #tpu.pipeline_mode<synchronous>, transform_indices = @transform_1, window_bounds = array<i64: 3, 128, 128>}, {pipeline_mode = #tpu.pipeline_mode<synchronous>, transform_indices = @transform_2, window_bounds = array<i64: 3, 128, 128>}, {pipeline_mode = #tpu.pipeline_mode<synchronous>, transform_indices = @transform_3, window_bounds = array<i64: 1, 128>}, {transform_indices = @transform_4, window_bounds = array<i64: 16, 128>}]} {
    %c0 = arith.constant 0 : index
    %c0_0 = arith.constant 0 : index
    %0 = vector.load %arg1[%c0, %c0_0] : memref<16x128xf32, #tpu.memory_space<vmem>>, vector<16x128xf32>
    %1 = tpu.iota {dimensions = array<i32: 0>} : vector<16x1xi32>
    %c0_i32 = arith.constant 0 : i32
    %2 = vector.broadcast %c0_i32 : i32 to vector<16x1xi32>
    %3 = arith.cmpi sgt, %1, %2 : vector<16x1xi32>
    %4 = arith.extui %3 : vector<16x1xi1> to vector<16x1xi32>
    %5 = arith.sitofp %4 : vector<16x1xi32> to vector<16x1xf32>
    %c15_i32 = arith.constant 15 : i32
    %6 = vector.broadcast %c15_i32 : i32 to vector<16x1xi32>
    %7 = arith.cmpi slt, %1, %6 : vector<16x1xi32>
    %8 = arith.extui %7 : vector<16x1xi1> to vector<16x1xi32>
    %9 = arith.sitofp %8 : vector<16x1xi32> to vector<16x1xf32>
    %c1_i32 = arith.constant 1 : i32
    %10 = tpu.dynamic_rotate %0 by %c1_i32 dim 0 : vector<16x128xf32>, i32 -> vector<16x128xf32>
    %11 = vector.broadcast %5 : vector<16x1xf32> to vector<16x128xf32>
    %12 = arith.mulf %10, %11 : vector<16x128xf32>
    %c15_i32_1 = arith.constant 15 : i32
    %13 = tpu.dynamic_rotate %0 by %c15_i32_1 dim 0 : vector<16x128xf32>, i32 -> vector<16x128xf32>
    %14 = vector.broadcast %9 : vector<16x1xf32> to vector<16x128xf32>
    %15 = arith.mulf %13, %14 : vector<16x128xf32>
    %c0_2 = arith.constant 0 : index
    %c0_3 = arith.constant 0 : index
    %c0_4 = arith.constant 0 : index
    %16 = vector.load %arg2[%c0_2, %c0_3, %c0_4] : memref<3x128x128xf32, #tpu.memory_space<vmem>>, vector<1x128x128xf32>
    %17 = vector.shape_cast %16 : vector<1x128x128xf32> to vector<128x128xf32>
    %cst = arith.constant dense<0.000000e+00> : vector<16x128xf32>
    %18 = tpu.matmul %12, %17, %cst {dimension_numbers = #tpu.dot_dimension_numbers<[1], [0], [0], [1], [0, 0, 1, 1], [], []>} : vector<16x128xf32>, vector<128x128xf32>, vector<16x128xf32> -> vector<16x128xf32>
    %c1 = arith.constant 1 : index
    %c0_5 = arith.constant 0 : index
    %c0_6 = arith.constant 0 : index
    %19 = vector.load %arg2[%c1, %c0_5, %c0_6] : memref<3x128x128xf32, #tpu.memory_space<vmem>>, vector<1x128x128xf32>
    %20 = vector.shape_cast %19 : vector<1x128x128xf32> to vector<128x128xf32>
    %cst_7 = arith.constant dense<0.000000e+00> : vector<16x128xf32>
    %21 = tpu.matmul %0, %20, %cst_7 {dimension_numbers = #tpu.dot_dimension_numbers<[1], [0], [0], [1], [0, 0, 1, 1], [], []>} : vector<16x128xf32>, vector<128x128xf32>, vector<16x128xf32> -> vector<16x128xf32>
    %22 = arith.addf %18, %21 : vector<16x128xf32>
    %c2 = arith.constant 2 : index
    %c0_8 = arith.constant 0 : index
    %c0_9 = arith.constant 0 : index
    %23 = vector.load %arg2[%c2, %c0_8, %c0_9] : memref<3x128x128xf32, #tpu.memory_space<vmem>>, vector<1x128x128xf32>
    %24 = vector.shape_cast %23 : vector<1x128x128xf32> to vector<128x128xf32>
    %cst_10 = arith.constant dense<0.000000e+00> : vector<16x128xf32>
    %25 = tpu.matmul %15, %24, %cst_10 {dimension_numbers = #tpu.dot_dimension_numbers<[1], [0], [0], [1], [0, 0, 1, 1], [], []>} : vector<16x128xf32>, vector<128x128xf32>, vector<16x128xf32> -> vector<16x128xf32>
    %26 = arith.addf %22, %25 : vector<16x128xf32>
    %c0_11 = arith.constant 0 : index
    %c0_12 = arith.constant 0 : index
    %27 = vector.load %arg4[%c0_11, %c0_12] : memref<1x128xf32, #tpu.memory_space<vmem>>, vector<1x128xf32>
    %28 = vector.broadcast %27 : vector<1x128xf32> to vector<16x128xf32>
    %29 = arith.addf %26, %28 : vector<16x128xf32>
    %c1_i32_13 = arith.constant 1 : i32
    %30 = tpu.dynamic_rotate %29 by %c1_i32_13 dim 0 : vector<16x128xf32>, i32 -> vector<16x128xf32>
    %31 = vector.broadcast %5 : vector<16x1xf32> to vector<16x128xf32>
    %32 = arith.mulf %30, %31 : vector<16x128xf32>
    %c15_i32_14 = arith.constant 15 : i32
    %33 = tpu.dynamic_rotate %29 by %c15_i32_14 dim 0 : vector<16x128xf32>, i32 -> vector<16x128xf32>
    %34 = vector.broadcast %9 : vector<16x1xf32> to vector<16x128xf32>
    %35 = arith.mulf %33, %34 : vector<16x128xf32>
    %c0_15 = arith.constant 0 : index
    %c0_16 = arith.constant 0 : index
    %c0_17 = arith.constant 0 : index
    %36 = vector.load %arg3[%c0_15, %c0_16, %c0_17] : memref<3x128x128xf32, #tpu.memory_space<vmem>>, vector<1x128x128xf32>
    %37 = vector.shape_cast %36 : vector<1x128x128xf32> to vector<128x128xf32>
    %cst_18 = arith.constant dense<0.000000e+00> : vector<16x128xf32>
    %38 = tpu.matmul %32, %37, %cst_18 {dimension_numbers = #tpu.dot_dimension_numbers<[1], [0], [0], [1], [0, 0, 1, 1], [], []>} : vector<16x128xf32>, vector<128x128xf32>, vector<16x128xf32> -> vector<16x128xf32>
    %c1_19 = arith.constant 1 : index
    %c0_20 = arith.constant 0 : index
    %c0_21 = arith.constant 0 : index
    %39 = vector.load %arg3[%c1_19, %c0_20, %c0_21] : memref<3x128x128xf32, #tpu.memory_space<vmem>>, vector<1x128x128xf32>
    %40 = vector.shape_cast %39 : vector<1x128x128xf32> to vector<128x128xf32>
    %cst_22 = arith.constant dense<0.000000e+00> : vector<16x128xf32>
    %41 = tpu.matmul %29, %40, %cst_22 {dimension_numbers = #tpu.dot_dimension_numbers<[1], [0], [0], [1], [0, 0, 1, 1], [], []>} : vector<16x128xf32>, vector<128x128xf32>, vector<16x128xf32> -> vector<16x128xf32>
    %42 = arith.addf %38, %41 : vector<16x128xf32>
    %c2_23 = arith.constant 2 : index
    %c0_24 = arith.constant 0 : index
    %c0_25 = arith.constant 0 : index
    %43 = vector.load %arg3[%c2_23, %c0_24, %c0_25] : memref<3x128x128xf32, #tpu.memory_space<vmem>>, vector<1x128x128xf32>
    %44 = vector.shape_cast %43 : vector<1x128x128xf32> to vector<128x128xf32>
    %cst_26 = arith.constant dense<0.000000e+00> : vector<16x128xf32>
    %45 = tpu.matmul %35, %44, %cst_26 {dimension_numbers = #tpu.dot_dimension_numbers<[1], [0], [0], [1], [0, 0, 1, 1], [], []>} : vector<16x128xf32>, vector<128x128xf32>, vector<16x128xf32> -> vector<16x128xf32>
    %46 = arith.addf %42, %45 : vector<16x128xf32>
    %cst_27 = arith.constant 5.000000e-01 : f32
    %47 = vector.broadcast %cst_27 : f32 to vector<16x128xf32>
    %48 = arith.mulf %47, %46 : vector<16x128xf32>
    %cst_28 = arith.constant 0.707106769 : f32
    %49 = vector.broadcast %cst_28 : f32 to vector<16x128xf32>
    %50 = arith.mulf %46, %49 : vector<16x128xf32>
    %51 = math.erf %50 : vector<16x128xf32>
    %cst_29 = arith.constant 1.000000e+00 : f32
    %52 = vector.broadcast %cst_29 : f32 to vector<16x128xf32>
    %53 = arith.addf %52, %51 : vector<16x128xf32>
    %54 = arith.mulf %48, %53 : vector<16x128xf32>
    %55 = arith.addf %54, %0 : vector<16x128xf32>
    %c0_30 = arith.constant 0 : index
    %c0_31 = arith.constant 0 : index
    %56 = vector.load %arg5[%c0_30, %c0_31] : memref<16x128xf32, #tpu.memory_space<vmem>>, vector<16x128xf32>
    tpu.vector_store %arg5[%c0_30, %c0_31], %55 {strides = array<i32>} : memref<16x128xf32, #tpu.memory_space<vmem>>, vector<16x128xf32>,
    return
  }
  func.func @transform_0(%arg0: i32) -> (i32, i32) {
    %c0_i32 = arith.constant 0 : i32
    %c0_i32_0 = arith.constant 0 : i32
    return %arg0, %c0_i32 : i32, i32
  }
  func.func @transform_1(%arg0: i32) -> (i32, i32, i32) {
    %c0_i32 = arith.constant 0 : i32
    %c0_i32_0 = arith.constant 0 : i32
    %c0_i32_1 = arith.constant 0 : i32
    %c0_i32_2 = arith.constant 0 : i32
    return %c0_i32, %c0_i32_0, %c0_i32_1 : i32, i32, i32
  }
  func.func @transform_2(%arg0: i32) -> (i32, i32, i32) {
    %c0_i32 = arith.constant 0 : i32
    %c0_i32_0 = arith.constant 0 : i32
    %c0_i32_1 = arith.constant 0 : i32
    %c0_i32_2 = arith.constant 0 : i32
    return %c0_i32, %c0_i32_0, %c0_i32_1 : i32, i32, i32
  }
  func.func @transform_3(%arg0: i32) -> (i32, i32) {
    %c0_i32 = arith.constant 0 : i32
    %c0_i32_0 = arith.constant 0 : i32
    %c0_i32_1 = arith.constant 0 : i32
    return %c0_i32, %c0_i32_0 : i32, i32
  }
  func.func @transform_4(%arg0: i32) -> (i32, i32) {
    %c0_i32 = arith.constant 0 : i32
    %c0_i32_0 = arith.constant 0 : i32
    return %arg0, %c0_i32 : i32, i32
  }
}

</mosaic_0001>

<bundles_post_ra>
// kernel: res_block_forward.1
= control target key start
LH: loop header
LB: loop body
LE: loop exit
PB: predicated region body
PF: predicated region fallthrough
CT: control target
= control target key end

     0   :  { %9 = vsyncpa [#allocation3], 0  ;;  %s1039_s15 = smov [#allocation2]   ;;  %s1274_s0 = inlined_call_operand.vmem [shape: f32[16,128], index: 0, kind: input, shape index: {}]   ;;  %s1275_s1 = inlined_call_operand.vmem [shape: f32[3,128,128], index: 1, kind: input, shape index: {}]   ;;  %s1276_s2 = inlined_call_operand.hbm [shape: f32[3,128,128], index: 2, kind: input, shape index: {}]   ;;  %s1277_s3 = inlined_call_operand.vmem [shape: f32[1,128], index: 3, kind: input, shape index: {}]   ;;  %s1278_s4 = inlined_call_operand.vmem [shape: f32[16,128], index: 4, kind: output, shape index: {}]  }
   0x1   :  { %s19_s16 = sshll.u32 %s1039_s15, 4  ;;  %s20_s16 = int_to_ptr.vmem [resolvable:$true] %s19_s16 }
   0x2   :  { %s1025_s17 = scalar_lea.vmem %s20_s16, 6144  ;;  %p1030_p1 = scmp.lt.s32.totalorder %s20_s16, %s20_s16 }
   0x3   :  { %p1026_p0 = scmp.ne.s32.totalorder %s20_s16, %s1025_s17  ;;  %p1031_p2 = scmp.lt.s32.totalorder %s1025_s17, %s1025_s17 }
   0x5   :  { %p1032_p3 = por %p1031_p2, %p1030_p1 }
   0x7   :  { %p1033_p4 = pnand %p1032_p3, %p1026_p0 }
   0x9   :  { %1036 = shalt.err (!%p1033_p4)
}
   0xa   :  { %s1040_s18 = smov 128   ;;  %s1041_s19 = smov 8  }
   0xb   :  { %25 = dma.hbm_to_vmem [thread:$0]  %s1276_s2, 6144, %s20_s16, [#allocation3], %s1040_s18, %s1040_s18, %s1041_s19  }
   0xc   :  { %1037 = dma.done.wait [#allocation3], 6144  }
   0xd   :  { %1038 = vsyncadd [#allocation3], 4294961152  ;;  %v673_v0 = vld [vmem:[%s1275_s1 + $0xf8] sm:$0xff]  ;;  %v672_v2 = vld [vmem:[%s1275_s1 + $0xf0] sm:$0xff]  ;;  %v33_v18 = vlaneseq  ;;  %v1042_v36 = vmov 0.0  }
   0xe   :  { %v77_v1 = vld [vmem:[%s1275_s1 + $0x78] sm:$0xff]  ;;  %799 = vmatprep.subr.mxu0 %v673_v0  ;;  %v76_v3 = vld [vmem:[%s1275_s1 + $0x70] sm:$0xff]  ;;  %v671_v4 = vld [vmem:[%s1275_s1 + $0xe8] sm:$0xff] }
   0xf   :  { %834 = vmatprep.subr.mxu1 %v77_v1  ;;  %800 = vmatpush3.msra.mxu0 %v673_v0  ;;  %v75_v5 = vld [vmem:[%s1275_s1 + $0x68] sm:$0xff]  ;;  %v670_v6 = vld [vmem:[%s1275_s1 + $0xe0] sm:$0xff]  ;;  %v669_v8 = vld [vmem:[%s1275_s1 + $0xd8] sm:$0xff]  ;;  %v1147_v25 = vshrl.u32 %v33_v18, 7 }
  0x10   :  { %835 = vmatpush3.msra.mxu1 %v77_v1  ;;  %801 = vmatprep.subr.mxu0 %v672_v2  ;;  %v74_v7 = vld [vmem:[%s1275_s1 + $0x60] sm:$0xff]  ;;  %v73_v9 = vld [vmem:[%s1275_s1 + $0x58] sm:$0xff]  ;;  %v668_v10 = vld [vmem:[%s1275_s1 + $0xd0] sm:$0xff] }
  0x11   :  { %836 = vmatprep.subr.mxu1 %v76_v3  ;;  %802 = vmatpush3.msra.mxu0 %v672_v2  ;;  %v72_v11 = vld [vmem:[%s1275_s1 + $0x50] sm:$0xff]  ;;  %v667_v12 = vld [vmem:[%s1275_s1 + $0xc8] sm:$0xff]  ;;  %v666_v14 = vld [vmem:[%s1275_s1 + $0xc0] sm:$0xff]  ;;  %vm36_vm0 = vcmp.gt.s32.totalorder %v1147_v25, 0  ;;  %vm50_vm1 = vcmp.lt.s32.totalorder %v1147_v25, 1  ;;  %vm57_vm2 = vcmp.lt.s32.totalorder %v1147_v25, 7 }
  0x12   :  { %837 = vmatpush3.msra.mxu1 %v76_v3  ;;  %803 = vmatprep.subr.mxu0 %v671_v4  ;;  %v71_v13 = vld [vmem:[%s1275_s1 + $0x48] sm:$0xff]  ;;  %v70_v15 = vld [vmem:[%s1275_s1 + $0x40] sm:$0xff]  ;;  %v665_v16 = vld [vmem:[%s1275_s1 + $0xb8] sm:$0xff]  ;;  %v1178_v37 = vsel %vm36_vm0, 1.0, %v1042_v36  ;;  %v35_v57 = vadd.s32 8, %v1147_v25 }
  0x13   :  { %838 = vmatprep.subr.mxu1 %v75_v5  ;;  %804 = vmatpush3.msra.mxu0 %v671_v4  ;;  %v69_v17 = vld [vmem:[%s1275_s1 + $0x38] sm:$0xff]  ;;  %v664_v19 = vld [vmem:[%s1275_s1 + $0xb0] sm:$0xff]  ;;  %v663_v21 = vld [vmem:[%s1275_s1 + $0xa8] sm:$0xff] }
  0x14   :  { %839 = vmatpush3.msra.mxu1 %v75_v5  ;;  %805 = vmatprep.subr.mxu0 %v670_v6  ;;  %v68_v20 = vld [vmem:[%s1275_s1 + $0x30] sm:$0xff]  ;;  %v67_v22 = vld [vmem:[%s1275_s1 + $0x28] sm:$0xff]  ;;  %v1140_v23 = vld [vmem:[%s1274_s0] sm:$0xff]  ;;  %vm43_vm3 = vcmp.lt.s32.totalorder %v35_v57, 15 }
  0x15   :  { %840 = vmatprep.subr.mxu1 %v74_v7  ;;  %806 = vmatpush3.msra.mxu0 %v670_v6  ;;  %v1145_v24 = vld [vmem:[%s1274_s0 + $0x8] sm:$0xff]  ;;  %v662_v26 = vld [vmem:[%s1275_s1 + $0xa0] sm:$0xff]  ;;  %v661_v28 = vld [vmem:[%s1275_s1 + $0x98] sm:$0xff]  ;;  %v48_v30 = vrot.slane %v1140_v23, 7  ;;  %v55_v41 = vrot.slane %v1140_v23, 1  ;;  %v1242_v61 = vsel %vm43_vm3, 1.0, %v1042_v36 }
  0x16   :  { %841 = vmatpush3.msra.mxu1 %v74_v7  ;;  %807 = vmatprep.subr.mxu0 %v669_v8  ;;  %v66_v27 = vld [vmem:[%s1275_s1 + $0x20] sm:$0xff]  ;;  %v65_v29 = vld [vmem:[%s1275_s1 + $0x18] sm:$0xff]  ;;  %v49_v31 = vrot.slane %v1145_v24, 7  ;;  %v660_v32 = vld [vmem:[%s1275_s1 + $0x90] sm:$0xff]  ;;  %v56_v42 = vrot.slane %v1145_v24, 1 }
  0x17   :  { %842 = vmatprep.subr.mxu1 %v73_v9  ;;  %808 = vmatpush3.msra.mxu0 %v669_v8  ;;  %v64_v33 = vld [vmem:[%s1275_s1 + $0x10] sm:$0xff]  ;;  %v659_v34 = vld [vmem:[%s1275_s1 + $0x88] sm:$0xff]  ;;  %v658_v39 = vld [vmem:[%s1275_s1 + $0x80] sm:$0xff] }
  0x18   :  { %843 = vmatpush3.msra.mxu1 %v73_v9  ;;  %809 = vmatprep.subr.mxu0 %v668_v10  ;;  %v63_v35 = vld [vmem:[%s1275_s1 + $0x8] sm:$0xff]  ;;  %v52_v38 = vsel %vm50_vm1, %v49_v31, %v48_v30  ;;  %v62_v40 = vld [vmem:[%s1275_s1] sm:$0xff]  ;;  %v51_v44 = vsel %vm50_vm1, %v48_v30, %v49_v31  ;;  %v689_v45 = vld [vmem:[%s1275_s1 + $0x178] sm:$0xff]  ;;  %v58_v46 = vsel %vm57_vm2, %v55_v41, %v56_v42 }
  0x19   :  { %844 = vmatprep.subr.mxu1 %v72_v11  ;;  %810 = vmatpush3.msra.mxu0 %v668_v10  ;;  %v53_v43 = vmul.f32 %v1178_v37, %v52_v38  ;;  %v688_v47 = vld [vmem:[%s1275_s1 + $0x170] sm:$0xff]  ;;  %v687_v48 = vld [vmem:[%s1275_s1 + $0x168] sm:$0xff]  ;;  %v686_v49 = vld [vmem:[%s1275_s1 + $0x160] sm:$0xff]  ;;  %v59_v62 = vsel %vm57_vm2, %v56_v42, %v55_v41 }
  0x1a   :  { %845 = vmatpush3.msra.mxu1 %v72_v11  ;;  %811 = vmatprep.subr.mxu0 %v667_v12  ;;  %v685_v50 = vld [vmem:[%s1275_s1 + $0x158] sm:$0xff]  ;;  %v684_v51 = vld [vmem:[%s1275_s1 + $0x150] sm:$0xff]  ;;  %v683_v52 = vld [vmem:[%s1275_s1 + $0x148] sm:$0xff]  ;;  %v61_v1 = vmul.f32 %v1242_v61, %v59_v62 }
  0x1b   :  { %846 = vmatprep.subr.mxu1 %v71_v13  ;;  %812 = vmatpush3.msra.mxu0 %v667_v12  ;;  %v682_v53 = vld [vmem:[%s1275_s1 + $0x140] sm:$0xff]  ;;  %v681_v54 = vld [vmem:[%s1275_s1 + $0x138] sm:$0xff]  ;;  %v680_v55 = vld [vmem:[%s1275_s1 + $0x130] sm:$0xff] }
  0x1c   :  { %847 = vmatpush3.msra.mxu1 %v71_v13  ;;  %813 = vmatprep.subr.mxu0 %v666_v14  ;;  %v679_v56 = vld [vmem:[%s1275_s1 + $0x128] sm:$0xff]  ;;  %v678_v58 = vld [vmem:[%s1275_s1 + $0x120] sm:$0xff]  ;;  %v677_v59 = vld [vmem:[%s1275_s1 + $0x118] sm:$0xff] }
  0x1d   :  { %848 = vmatprep.subr.mxu1 %v70_v15  ;;  %814 = vmatpush3.msra.mxu0 %v666_v14  ;;  %v676_v60 = vld [vmem:[%s1275_s1 + $0x110] sm:$0xff]  ;;  %v675_v63 = vld [vmem:[%s1275_s1 + $0x108] sm:$0xff]  ;;  %v674_v0 = vld [vmem:[%s1275_s1 + $0x100] sm:$0xff] }
  0x1e   :  { %849 = vmatpush3.msra.mxu1 %v70_v15  ;;  %815 = vmatprep.subr.mxu0 %v665_v16  ;;  %v392_v2 = vld [vmem:[#allocation2 + $0xf8] sm:$0xff]  ;;  %v391_v3 = vld [vmem:[#allocation2 + $0xf0] sm:$0xff]  ;;  %v390_v5 = vld [vmem:[#allocation2 + $0xe8] sm:$0xff] }
  0x1f   :  { %850 = vmatprep.subr.mxu1 %v69_v17  ;;  %816 = vmatpush3.msra.mxu0 %v665_v16  ;;  %v375_v4 = vld [vmem:[#allocation2 + $0x78] sm:$0xff]  ;;  %v374_v6 = vld [vmem:[#allocation2 + $0x70] sm:$0xff]  ;;  %v373_v7 = vld [vmem:[#allocation2 + $0x68] sm:$0xff] }
  0x20   :  { %851 = vmatpush3.msra.mxu1 %v69_v17  ;;  %817 = vmatprep.subr.mxu0 %v664_v19  ;;  %v389_v8 = vld [vmem:[#allocation2 + $0xe0] sm:$0xff]  ;;  %v388_v10 = vld [vmem:[#allocation2 + $0xd8] sm:$0xff]  ;;  %v387_v12 = vld [vmem:[#allocation2 + $0xd0] sm:$0xff] }
  0x21   :  { %852 = vmatprep.subr.mxu1 %v68_v20  ;;  %818 = vmatpush3.msra.mxu0 %v664_v19  ;;  %v372_v9 = vld [vmem:[#allocation2 + $0x60] sm:$0xff]  ;;  %v371_v11 = vld [vmem:[#allocation2 + $0x58] sm:$0xff]  ;;  %v370_v13 = vld [vmem:[#allocation2 + $0x50] sm:$0xff] }
  0x22   :  { %853 = vmatpush3.msra.mxu1 %v68_v20  ;;  %819 = vmatprep.subr.mxu0 %v663_v21  ;;  %v386_v14 = vld [vmem:[#allocation2 + $0xc8] sm:$0xff]  ;;  %v385_v16 = vld [vmem:[#allocation2 + $0xc0] sm:$0xff]  ;;  %v384_v18 = vld [vmem:[#allocation2 + $0xb8] sm:$0xff] }
  0x23   :  { %854 = vmatprep.subr.mxu1 %v67_v22  ;;  %820 = vmatpush3.msra.mxu0 %v663_v21  ;;  %v369_v15 = vld [vmem:[#allocation2 + $0x48] sm:$0xff]  ;;  %v368_v17 = vld [vmem:[#allocation2 + $0x40] sm:$0xff]  ;;  %v367_v19 = vld [vmem:[#allocation2 + $0x38] sm:$0xff] }
  0x24   :  { %855 = vmatpush3.msra.mxu1 %v67_v22  ;;  %821 = vmatprep.subr.mxu0 %v662_v26  ;;  %v383_v20 = vld [vmem:[#allocation2 + $0xb0] sm:$0xff]  ;;  %v382_v22 = vld [vmem:[#allocation2 + $0xa8] sm:$0xff]  ;;  %v364_v31 = vld [vmem:[#allocation2 + $0x20] sm:$0xff] }
  0x25   :  { %856 = vmatprep.subr.mxu1 %v66_v27  ;;  %822 = vmatpush3.msra.mxu0 %v662_v26  ;;  %v366_v21 = vld [vmem:[#allocation2 + $0x30] sm:$0xff]  ;;  %v381_v26 = vld [vmem:[#allocation2 + $0xa0] sm:$0xff]  ;;  %v378_v30 = vld [vmem:[#allocation2 + $0x88] sm:$0xff] }
  0x26   :  { %857 = vmatpush3.msra.mxu1 %v66_v27  ;;  %823 = vmatprep.subr.mxu0 %v661_v28  ;;  %v380_v27 = vld [vmem:[#allocation2 + $0x98] sm:$0xff]  ;;  %v361_v36 = vld [vmem:[#allocation2 + $0x8] sm:$0xff]  ;;  %v360_v38 = vld [vmem:[#allocation2] sm:$0xff] }
  0x27   :  { %858 = vmatprep.subr.mxu1 %v65_v29  ;;  %824 = vmatpush3.msra.mxu0 %v661_v28  ;;  %v379_v28 = vld [vmem:[#allocation2 + $0x90] sm:$0xff]  ;;  %v556_v62 = vld [vmem:[#allocation2 + $0x160] sm:$0xff] }
  0x28   :  { %859 = vmatpush3.msra.mxu1 %v65_v29  ;;  %825 = vmatprep.subr.mxu0 %v660_v32  ;;  %v365_v29 = vld [vmem:[#allocation2 + $0x28] sm:$0xff] }
  0x29   :  { %860 = vmatprep.subr.mxu1 %v64_v33  ;;  %826 = vmatpush3.msra.mxu0 %v660_v32  ;;  %v377_v32 = vld [vmem:[#allocation2 + $0x80] sm:$0xff] }
  0x2a   :  { %861 = vmatpush3.msra.mxu1 %v64_v33  ;;  %827 = vmatprep.subr.mxu0 %v659_v34  ;;  %v363_v33 = vld [vmem:[#allocation2 + $0x18] sm:$0xff] }
  0x2b   :  { %862 = vmatprep.subr.mxu1 %v63_v35  ;;  %828 = vmatpush3.msra.mxu0 %v659_v34  ;;  %v362_v34 = vld [vmem:[#allocation2 + $0x10] sm:$0xff] }
  0x2c   :  { %863 = vmatpush3.msra.mxu1 %v63_v35  ;;  %829 = vmatprep.subr.mxu0 %v658_v39  ;;  %v559_v35 = vld [vmem:[#allocation2 + $0x178] sm:$0xff] }
  0x2d   :  { %864 = vmatprep.subr.mxu1 %v62_v40  ;;  %830 = vmatpush3.msra.mxu0 %v658_v39 }
  0x2e   :  { %831 = vmatprep.mubr.f32.mxu0 %v1140_v23  ;;  %865 = vmatpush3.msra.mxu1 %v62_v40 }
  0x2f   :  { %866 = vmatprep.mubr.f32.mxu1 %v53_v43  ;;  %832 = vmatmul.mubr.f32.vlgmr.msra.gmra.mxu0 %v1145_v24 }
  0x30   :  { %867 = vmatmul.mubr.f32.vlgmr.msra.gmra.mxu1 %v51_v44  ;;  %869 = vmatprep.subr.mxu0 %v689_v45 }
  0x31   :  { %901 = vmatprep.mubr.f32.mxu0 %v58_v46  ;;  %870 = vmatpush3.msra.mxu0 %v689_v45  ;;  %v690_v45 = vld [vmem:[%s1277_s3] ss:$0 sm:$0xff] }
  0x32   :  { %871 = vmatprep.subr.mxu0 %v688_v47  ;;  %904 = vmatprep.subr.mxu1 %v392_v2 }
  0x33   :  { %872 = vmatpush3.msra.mxu0 %v688_v47  ;;  %905 = vmatpush3.msra.mxu1 %v392_v2  ;;  %v553_v2 = vld [vmem:[#allocation2 + $0x148] sm:$0xff] }
  0x34   :  { %873 = vmatprep.subr.mxu0 %v687_v48  ;;  %906 = vmatprep.subr.mxu1 %v391_v3 }
  0x35   :  { %874 = vmatpush3.msra.mxu0 %v687_v48  ;;  %907 = vmatpush3.msra.mxu1 %v391_v3  ;;  %v552_v3 = vld [vmem:[#allocation2 + $0x140] sm:$0xff] }
  0x36   :  { %875 = vmatprep.subr.mxu0 %v686_v49  ;;  %908 = vmatprep.subr.mxu1 %v390_v5 }
  0x37   :  { %876 = vmatpush3.msra.mxu0 %v686_v49  ;;  %909 = vmatpush3.msra.mxu1 %v390_v5  ;;  %v549_v5 = vld [vmem:[#allocation2 + $0x128] sm:$0xff] }
  0x38   :  { %877 = vmatprep.subr.mxu0 %v685_v50  ;;  %910 = vmatprep.subr.mxu1 %v389_v8 }
  0x39   :  { %878 = vmatpush3.msra.mxu0 %v685_v50  ;;  %911 = vmatpush3.msra.mxu1 %v389_v8  ;;  %v546_v8 = vld [vmem:[#allocation2 + $0x110] sm:$0xff] }
  0x3a   :  { %879 = vmatprep.subr.mxu0 %v684_v51  ;;  %912 = vmatprep.subr.mxu1 %v388_v10 }
  0x3b   :  { %880 = vmatpush3.msra.mxu0 %v684_v51  ;;  %913 = vmatpush3.msra.mxu1 %v388_v10  ;;  %v544_v10 = vld [vmem:[#allocation2 + $0x100] sm:$0xff] }
  0x3c   :  { %881 = vmatprep.subr.mxu0 %v683_v52  ;;  %914 = vmatprep.subr.mxu1 %v387_v12 }
  0x3d   :  { %882 = vmatpush3.msra.mxu0 %v683_v52  ;;  %915 = vmatpush3.msra.mxu1 %v387_v12 }
  0x3e   :  { %883 = vmatprep.subr.mxu0 %v682_v53  ;;  %916 = vmatprep.subr.mxu1 %v386_v14 }
  0x3f   :  { %884 = vmatpush3.msra.mxu0 %v682_v53  ;;  %917 = vmatpush3.msra.mxu1 %v386_v14 }
  0x40   :  { %885 = vmatprep.subr.mxu0 %v681_v54  ;;  %918 = vmatprep.subr.mxu1 %v385_v16 }
  0x41   :  { %886 = vmatpush3.msra.mxu0 %v681_v54  ;;  %919 = vmatpush3.msra.mxu1 %v385_v16  ;;  %v558_v54 = vld [vmem:[#allocation2 + $0x170] sm:$0xff] }
  0x42   :  { %887 = vmatprep.subr.mxu0 %v680_v55  ;;  %920 = vmatprep.subr.mxu1 %v384_v18 }
  0x43   :  { %888 = vmatpush3.msra.mxu0 %v680_v55  ;;  %921 = vmatpush3.msra.mxu1 %v384_v18 }
  0x44   :  { %889 = vmatprep.subr.mxu0 %v679_v56  ;;  %922 = vmatprep.subr.mxu1 %v383_v20 }
  0x45   :  { %890 = vmatpush3.msra.mxu0 %v679_v56  ;;  %923 = vmatpush3.msra.mxu1 %v383_v20 }
  0x46   :  { %891 = vmatprep.subr.mxu0 %v678_v58  ;;  %924 = vmatprep.subr.mxu1 %v382_v22 }
  0x47   :  { %892 = vmatpush3.msra.mxu0 %v678_v58  ;;  %925 = vmatpush3.msra.mxu1 %v382_v22  ;;  %v557_v58 = vld [vmem:[#allocation2 + $0x168] sm:$0xff] }
  0x48   :  { %893 = vmatprep.subr.mxu0 %v677_v59  ;;  %926 = vmatprep.subr.mxu1 %v381_v26 }
  0x49   :  { %894 = vmatpush3.msra.mxu0 %v677_v59  ;;  %927 = vmatpush3.msra.mxu1 %v381_v26 }
  0x4a   :  { %895 = vmatprep.subr.mxu0 %v676_v60  ;;  %928 = vmatprep.subr.mxu1 %v380_v27 }
  0x4b   :  { %896 = vmatpush3.msra.mxu0 %v676_v60  ;;  %929 = vmatpush3.msra.mxu1 %v380_v27 }
  0x4c   :  { %897 = vmatprep.subr.mxu0 %v675_v63  ;;  %930 = vmatprep.subr.mxu1 %v379_v28 }
  0x4d   :  { %898 = vmatpush3.msra.mxu0 %v675_v63  ;;  %931 = vmatpush3.msra.mxu1 %v379_v28 }
  0x4e   :  { %899 = vmatprep.subr.mxu0 %v674_v0  ;;  %932 = vmatprep.subr.mxu1 %v378_v30 }
  0x4f   :  { %900 = vmatpush3.msra.mxu0 %v674_v0  ;;  %933 = vmatpush3.msra.mxu1 %v378_v30  ;;  %v555_v0 = vld [vmem:[#allocation2 + $0x158] sm:$0xff] }
  0x50   :  { %902 = vmatmul.mubr.f32.vlgmr.msra.gmra.mxu0 %v61_v1  ;;  %939 = vmatprep.subr.mxu0 %v375_v4  ;;  %v554_v1 = vld [vmem:[#allocation2 + $0x150] sm:$0xff] }
  0x51   :  { %940 = vmatpush3.msra.mxu0 %v375_v4  ;;  %934 = vmatprep.subr.mxu1 %v377_v32  ;;  %v550_v4 = vld [vmem:[#allocation2 + $0x130] sm:$0xff] }
  0x52   :  { %941 = vmatprep.subr.mxu0 %v374_v6  ;;  %935 = vmatpush3.msra.mxu1 %v377_v32 }
  0x53   :  { %942 = vmatpush3.msra.mxu0 %v374_v6  ;;  %974 = vmatprep.subr.mxu1 %v559_v35  ;;  %v548_v6 = vld [vmem:[#allocation2 + $0x120] sm:$0xff] }
  0x54   :  { %943 = vmatprep.subr.mxu0 %v373_v7 }
  0x55   :  { %944 = vmatpush3.msra.mxu0 %v373_v7  ;;  %v547_v7 = vld [vmem:[#allocation2 + $0x118] sm:$0xff] }
  0x56   :  { %945 = vmatprep.subr.mxu0 %v372_v9 }
  0x57   :  { %946 = vmatpush3.msra.mxu0 %v372_v9  ;;  %v545_v9 = vld [vmem:[#allocation2 + $0x108] sm:$0xff] }
  0x58   :  { %947 = vmatprep.subr.mxu0 %v371_v11 }
  0x59   :  { %948 = vmatpush3.msra.mxu0 %v371_v11 }
  0x5a   :  { %949 = vmatprep.subr.mxu0 %v370_v13 }
  0x5b   :  { %950 = vmatpush3.msra.mxu0 %v370_v13 }
  0x5c   :  { %951 = vmatprep.subr.mxu0 %v369_v15 }
  0x5d   :  { %952 = vmatpush3.msra.mxu0 %v369_v15 }
  0x5e   :  { %953 = vmatprep.subr.mxu0 %v368_v17 }
  0x5f   :  { %954 = vmatpush3.msra.mxu0 %v368_v17 }
  0x60   :  { %955 = vmatprep.subr.mxu0 %v367_v19 }
  0x61   :  { %956 = vmatpush3.msra.mxu0 %v367_v19 }
  0x62   :  { %957 = vmatprep.subr.mxu0 %v366_v21 }
  0x63   :  { %958 = vmatpush3.msra.mxu0 %v366_v21 }
  0x64   :  { %959 = vmatprep.subr.mxu0 %v365_v29 }
  0x65   :  { %960 = vmatpush3.msra.mxu0 %v365_v29 }
  0x66   :  { %961 = vmatprep.subr.mxu0 %v364_v31 }
  0x67   :  { %962 = vmatpush3.msra.mxu0 %v364_v31 }
  0x68   :  { %963 = vmatprep.subr.mxu0 %v363_v33 }
  0x69   :  { %964 = vmatpush3.msra.mxu0 %v363_v33 }
  0x6a   :  { %965 = vmatprep.subr.mxu0 %v362_v34 }
  0x6b   :  { %966 = vmatpush3.msra.mxu0 %v362_v34 }
  0x6c   :  { %967 = vmatprep.subr.mxu0 %v361_v36 }
  0x6d   :  { %968 = vmatpush3.msra.mxu0 %v361_v36 }
  0x6e   :  { %969 = vmatprep.subr.mxu0 %v360_v38 }
  0x6f   :  { %970 = vmatpush3.msra.mxu0 %v360_v38 }
  0xef   :  { %v833_v39 = vpop.f32.mrf.mxu0 }
  0xf0   :  { %v868_v40 = vpop.f32.mrf.mxu1 }
  0xf1   :  { %v161_v41 = vpop.f32.mrf.mxu0  ;;  %v242_v43 = vadd.f32 %v868_v40, %v833_v39 }
  0xf2   :  { %v236_v42 = vpop.f32.mrf.mxu1 }
  0xf3   :  { %v237_v46 = vadd.f32 %v236_v42, %v161_v41 }
 0x110   :  { %v903_v44 = vpop.f32.mrf.mxu0 }
 0x111   :  { %v338_v47 = vadd.f32 %v903_v44, %v242_v43 }
 0x112   :  { %v328_v48 = vpop.f32.mrf.mxu0 }
 0x113   :  { %v347_v49 = vadd.f32 %v690_v45, %v338_v47  ;;  %v337_v50 = vadd.f32 %v328_v48, %v237_v46 }
 0x115   :  { %v346_v51 = vadd.f32 %v690_v45, %v337_v50  ;;  %v349_v52 = vrot.slane %v347_v49, 7  ;;  %v355_v56 = vrot.slane %v347_v49, 1 }
 0x117   :  { %v348_v53 = vrot.slane %v346_v51, 7  ;;  %936 = vmatprep.mubr.f32.mxu1 %v346_v51  ;;  %v354_v55 = vrot.slane %v346_v51, 1 }
 0x118   :  { %937 = vmatmul.mubr.f32.vlgmr.msra.gmra.mxu1 %v347_v49 }
 0x119   :  { %975 = vmatpush3.msra.mxu1 %v559_v35  ;;  %v356_v57 = vsel %vm57_vm2, %v354_v55, %v355_v56  ;;  %v351_v59 = vsel %vm50_vm1, %v349_v52, %v348_v53  ;;  %v350_v63 = vsel %vm50_vm1, %v348_v53, %v349_v52  ;;  %v357_v11 = vsel %vm57_vm2, %v355_v56, %v354_v55 }
 0x11a   :  { %976 = vmatprep.subr.mxu1 %v558_v54  ;;  %1006 = vmatprep.mubr.f32.mxu1 %v356_v57  ;;  %v352_v60 = vmul.f32 %v1178_v37, %v351_v59  ;;  %v551_v37 = vld [vmem:[#allocation2 + $0x138] sm:$0xff]  ;;  %v359_v12 = vmul.f32 %v1242_v61, %v357_v11 }
 0x11b   :  { %977 = vmatpush3.msra.mxu1 %v558_v54 }
 0x11c   :  { %978 = vmatprep.subr.mxu1 %v557_v58  ;;  %971 = vmatprep.mubr.f32.mxu0 %v352_v60 }
 0x11d   :  { %979 = vmatpush3.msra.mxu1 %v557_v58  ;;  %972 = vmatmul.mubr.f32.vlgmr.msra.gmra.mxu0 %v350_v63 }
 0x11e   :  { %980 = vmatprep.subr.mxu1 %v556_v62 }
 0x11f   :  { %981 = vmatpush3.msra.mxu1 %v556_v62 }
 0x120   :  { %982 = vmatprep.subr.mxu1 %v555_v0 }
 0x121   :  { %983 = vmatpush3.msra.mxu1 %v555_v0 }
 0x122   :  { %984 = vmatprep.subr.mxu1 %v554_v1 }
 0x123   :  { %985 = vmatpush3.msra.mxu1 %v554_v1 }
 0x124   :  { %986 = vmatprep.subr.mxu1 %v553_v2 }
 0x125   :  { %987 = vmatpush3.msra.mxu1 %v553_v2 }
 0x126   :  { %988 = vmatprep.subr.mxu1 %v552_v3 }
 0x127   :  { %989 = vmatpush3.msra.mxu1 %v552_v3 }
 0x128   :  { %990 = vmatprep.subr.mxu1 %v551_v37 }
 0x129   :  { %991 = vmatpush3.msra.mxu1 %v551_v37 }
 0x12a   :  { %992 = vmatprep.subr.mxu1 %v550_v4 }
 0x12b   :  { %993 = vmatpush3.msra.mxu1 %v550_v4 }
 0x12c   :  { %994 = vmatprep.subr.mxu1 %v549_v5 }
 0x12d   :  { %995 = vmatpush3.msra.mxu1 %v549_v5 }
 0x12e   :  { %996 = vmatprep.subr.mxu1 %v548_v6 }
 0x12f   :  { %997 = vmatpush3.msra.mxu1 %v548_v6 }
 0x130   :  { %998 = vmatprep.subr.mxu1 %v547_v7 }
 0x131   :  { %999 = vmatpush3.msra.mxu1 %v547_v7 }
 0x132   :  { %1000 = vmatprep.subr.mxu1 %v546_v8 }
 0x133   :  { %1001 = vmatpush3.msra.mxu1 %v546_v8 }
 0x134   :  { %1002 = vmatprep.subr.mxu1 %v545_v9 }
 0x135   :  { %1003 = vmatpush3.msra.mxu1 %v545_v9 }
 0x136   :  { %1004 = vmatprep.subr.mxu1 %v544_v10 }
 0x137   :  { %1005 = vmatpush3.msra.mxu1 %v544_v10 }
 0x138   :  { %1007 = vmatmul.mubr.f32.vlgmr.msra.gmra.mxu1 %v359_v12 }
 0x1d8   :  { %v938_v13 = vpop.f32.mrf.mxu1 }
 0x1da   :  { %v459_v15 = vpop.f32.mrf.mxu1 }
 0x1dd   :  { %v973_v14 = vpop.f32.mrf.mxu0 }
 0x1de   :  { %v540_v17 = vadd.f32 %v973_v14, %v938_v13 }
 0x1df   :  { %v534_v16 = vpop.f32.mrf.mxu0 }
 0x1e0   :  { %v535_v19 = vadd.f32 %v534_v16, %v459_v15 }
 0x1f8   :  { %v1008_v18 = vpop.f32.mrf.mxu1 }
 0x1f9   :  { %v636_v20 = vadd.f32 %v1008_v18, %v540_v17 }
 0x1fa   :  { %v626_v21 = vpop.f32.mrf.mxu1 }
 0x1fb   :  { %v640_v22 = vmul.f32 0.70710677, %v636_v20  ;;  %v635_v26 = vadd.f32 %v626_v21, %v535_v19  ;;  %v638_v28 = vmul.f32 0.5, %v636_v20 }
 0x1fd   :  { %1013 = verf.f32 %v640_v22  ;;  %v639_v25 = vmul.f32 0.70710677, %v635_v26  ;;  %v637_v31 = vmul.f32 0.5, %v635_v26 }
 0x1ff   :  { %1015 = verf.f32 %v639_v25 }
 0x20a   :  { %v1014_v27 = vpop.eup %1013 }
 0x20b   :  { %v644_v29 = vadd.f32 1.0, %v1014_v27 }
 0x20c   :  { %v1016_v61 = vpop.eup %1015 }
 0x20d   :  { %v646_v30 = vmul.f32 %v644_v29, %v638_v28  ;;  %v643_v32 = vadd.f32 1.0, %v1016_v61 }
 0x20f   :  { %v648_v33 = vadd.f32 %v646_v30, %v1145_v24  ;;  %v645_v34 = vmul.f32 %v643_v32, %v637_v31 }
 0x211   :  { %650 = vst [vmem:[%s1278_s4 + $0x8] sm:$0xff] %v648_v33  ;;  %v647_v35 = vadd.f32 %v645_v34, %v1140_v23 }
 0x213   :  { %649 = vst [vmem:[%s1278_s4] sm:$0xff] %v647_v35 }
 0x214   :  { %655 = vsyncpa [#allocation3], 1 }

</bundles_post_ra>
